<compile_context>
chip_gen: v6e
topology: v6e:2x2x1
jax: 0.10.0
libtpu: 0.0.40
codegen_flags: <defaults>
</compile_context>

<pallas_src>
import jax
import jax.numpy as jnp
import numpy as np
from jax.experimental import pallas as pl
from jax.experimental.pallas import tpu as pltpu


def _round_up(x, m):
    return ((x + m - 1) // m) * m


def pick_sample_fold():
    """Samples folded per vreg row. 8 fills the 256-wide MXU (v6e/v7x);
    4 matches the 128x128 MXU tiles of v2-v5 (8 is merely neutral there)."""
    try:
        kind = jax.devices()[0].device_kind.lower()
    except Exception:
        return 8
    if any(t in kind for t in ("v2", "v3", "v4", "v5")):
        return 4
    return 8


def pack_params(params, fold):
    """Pack the 4 linear layers into 2 contiguous f32 slabs, block-diagonalized
    so `fold` samples share one vreg row.

    W-slab (width fold*H_p), row segments (each 8-row aligned):
        [ kron(I, W1_p) | kron(I, W2_p) | kron(I, W3_p) ]
    v-slab (width fold*H_p), 8-row-aligned bands:
        row 0 : tile(b1)   row 8 : tile(b2)   row 16: tile(b3)
        row 24: tile(b4) (cols 0:fold*O)      rows 32..: kron(I, W4_p).T
    """
    (w1, b1), (w2, b2), (w3, b3), (w4, b4) = params
    D, H = w1.shape
    O = w4.shape[1]
    D_p = _round_up(D, 8)
    H_p = _round_up(H, 8)
    GH = fold * H_p
    GO = fold * O
    eye = jnp.eye(fold, dtype=jnp.float32)

    def pad2(a, rows, cols):
        return jnp.pad(a.astype(jnp.float32),
                       ((0, rows - a.shape[0]), (0, cols - a.shape[1])))

    w1bd = jnp.kron(eye, pad2(w1, D_p, H_p))       # (fold*D_p, fold*H_p)
    w2bd = jnp.kron(eye, pad2(w2, H_p, H_p))       # (fold*H_p, fold*H_p)
    w3bd = jnp.kron(eye, pad2(w3, H_p, H_p))
    w4bd_t = jnp.kron(eye, pad2(w4, H_p, O)).T     # (fold*O,   fold*H_p)

    w_slab = jnp.concatenate([w1bd, w2bd, w3bd], axis=0)

    def band(row_vec):                             # (1, <=GH) -> (8, GH)
        row = jnp.pad(row_vec.astype(jnp.float32),
                      ((0, 0), (0, GH - row_vec.shape[1])))
        return jnp.pad(row, ((0, 7), (0, 0)))

    b1t = jnp.tile(pad2(b1, 1, H_p), (1, fold))    # (1, GH)
    b2t = jnp.tile(pad2(b2, 1, H_p), (1, fold))
    b3t = jnp.tile(pad2(b3, 1, H_p), (1, fold))
    b4t = jnp.tile(b4.astype(jnp.float32), (1, fold))   # (1, GO)

    w4_rows = _round_up(GO, 8)
    w4_band = jnp.pad(w4bd_t, ((0, w4_rows - GO), (0, 0)))
    v_slab = jnp.concatenate(
        [band(b1t), band(b2t), band(b3t), band(b4t), w4_band], axis=0)
    return w_slab, v_slab


def make_critic_kernel(fold, d_p, h_p, output_size):
    GD = fold * d_p
    GH = fold * h_p
    GO = fold * output_size
    r2 = GD
    r3 = GD + GH

    def critic_kernel(x_ref, w_ref, v_ref, o_ref):
        # 8-row-aligned static ref-view slices (cheap loads, no slab reshuffle).
        w1 = w_ref[0:GD, :]
        w2 = w_ref[r2:r2 + GH, :]
        w3 = w_ref[r3:r3 + GH, :]
        b1 = v_ref[0:1, :]
        b2 = v_ref[8:9, :]
        b3 = v_ref[16:17, :]
        b4 = v_ref[24:25, :][:, :GO]          # value lane-slice of one row
        w4t = v_ref[32:32 + GO, :]            # (fold*O, fold*H_p)

        x = x_ref[...]                        # (rows_t, fold*D_p): fold samples/row
        h = jnp.maximum(
            jnp.dot(x, w1, preferred_element_type=jnp.float32) + b1, 0.0)
        h = jnp.maximum(
            jnp.dot(h, w2, preferred_element_type=jnp.float32) + b2, 0.0)
        h = jnp.maximum(
            jnp.dot(h, w3, preferred_element_type=jnp.float32) + b3, 0.0)
        o = jax.lax.dot_general(
            h, w4t, (((1,), (1,)), ((), ())),
            preferred_element_type=jnp.float32) + b4
        o_ref[...] = o.astype(o_ref.dtype)    # (rows_t, fold*O)

    return critic_kernel


def critic_forward(state, action, packed, dims, fold):
    """state: [B, state_dim], action: [B, action_dim] -> [B, output_size]."""
    state_dim, action_dim, hidden, output_size = dims
    w_slab, v_slab = packed
    D = state_dim + action_dim
    D_p = _round_up(D, 8)
    H_p = _round_up(hidden, 8)

    B = state.shape[0]
    B_p = _round_up(B, fold)

    # One contiguous (B, D) slab (could be produced packed upstream in DDPG),
    # zero-padded so the reshape below folds `fold` samples per vreg row for free.
    x = jnp.concatenate([state, action], axis=1).astype(jnp.float32)
    x = jnp.pad(x, ((0, B_p - B), (0, D_p - D)))
    rows = B_p // fold
    x_f = x.reshape(rows, fold * D_p)          # free, contiguous reshape

    # Batch tiling: large tiles to amortize per-step overhead; >=2 grid steps
    # whenever possible so v7x's 2 TensorCores both get work on the parallel axis.
    max_rows = 512                             # fold*512 samples per grid step
    if rows > max_rows:
        block_rows = max_rows
    elif rows >= 16:
        block_rows = _round_up(pl.cdiv(rows, 2), 8)
    else:
        block_rows = rows
    grid = (pl.cdiv(rows, block_rows),)

    kernel = make_critic_kernel(fold, D_p, H_p, output_size)
    out_f = pl.pallas_call(
        kernel,
        out_shape=jax.ShapeDtypeStruct((rows, fold * output_size), jnp.float32),
        grid=grid,
        in_specs=[
            pl.BlockSpec((block_rows, fold * D_p), lambda i: (i, 0)),
            pl.BlockSpec(w_slab.shape, lambda i: (0, 0)),   # resident weights
            pl.BlockSpec(v_slab.shape, lambda i: (0, 0)),   # resident biases/W4
        ],
        out_specs=pl.BlockSpec((block_rows, fold * output_size),
                               lambda i: (i, 0)),
        compiler_params=pltpu.CompilerParams(
            dimension_semantics=("parallel",)),
    )(x_f, w_slab, v_slab)

    out = out_f.reshape(B_p, output_size)      # free reshape back to per-sample
    return out[:B]


def init_critic_params(key, input_size, hidden_size, output_size):
    """Deterministic init mirroring the PyTorch module's __init__."""
    def linear_init(k, fan_in, fan_out, bound):
        kw, kb = jax.random.split(k)
        w = jax.random.uniform(kw, (fan_in, fan_out), jnp.float32, -bound, bound)
        b = jax.random.uniform(kb, (1, fan_out), jnp.float32, -bound, bound)
        return w, b

    k1, k2, k3, k4 = jax.random.split(key, 4)
    p1 = linear_init(k1, input_size, hidden_size, 1.0 / np.sqrt(input_size))
    p2 = linear_init(k2, hidden_size, hidden_size, 1.0 / np.sqrt(hidden_size))
    p3 = linear_init(k3, hidden_size, hidden_size, 1.0 / np.sqrt(hidden_size))
    p4 = linear_init(k4, hidden_size, output_size, 0.003)
    return (p1, p2, p3, p4)


def critic_reference(state, action, params):
    x = jnp.concatenate([state, action], axis=1)
    (w1, b1), (w2, b2), (w3, b3), (w4, b4) = params
    h = jnp.maximum(x @ w1 + b1, 0.0)
    h = jnp.maximum(h @ w2 + b2, 0.0)
    h = jnp.maximum(h @ w3 + b3, 0.0)
    return h @ w4 + b4


if __name__ == "__main__":
    # Small DDPG-style shapes: state_dim + action_dim = input_size
    state_dim = 24
    action_dim = 8
    input_size = state_dim + action_dim   # 32
    hidden_size = 32
    output_size = 1

    fold = pick_sample_fold()
    dims = (state_dim, action_dim, hidden_size, output_size)

    key = jax.random.PRNGKey(0)
    k_params, k_state, k_action = jax.random.split(key, 3)
    params = init_critic_params(k_params, input_size, hidden_size, output_size)
    packed = pack_params(params, fold)

    # Small batch (launch-bound regime).
    batch = 8
    state = jax.random.normal(k_state, (batch, state_dim), jnp.float32)
    action = jax.random.normal(k_action, (batch, action_dim), jnp.float32)
    out = jax.block_until_ready(
        critic_forward(state, action, packed, dims, fold))
    ref = critic_reference(state, action, params)
    np.testing.assert_allclose(np.asarray(out), np.asarray(ref),
                               rtol=1e-5, atol=1e-5)

    # Larger ragged batch exercising the multi-step tiled path + padding.
    big = 1003
    ks2, ka2 = jax.random.split(jax.random.PRNGKey(1))
    state2 = jax.random.normal(ks2, (big, state_dim), jnp.float32)
    action2 = jax.random.normal(ka2, (big, action_dim), jnp.float32)
    out2 = jax.block_until_ready(
        critic_forward(state2, action2, packed, dims, fold))
    ref2 = critic_reference(state2, action2, params)
    np.testing.assert_allclose(np.asarray(out2), np.asarray(ref2),
                               rtol=1e-5, atol=1e-5)

    print("KERNEL_OK")
</pallas_src>

<mosaic_0001>
module attributes {stable_mosaic.version = 11 : i64} {
  func.func @critic_kernel(%arg0: i32, %arg1: memref<1x256xf32, #tpu.memory_space<vmem>>, %arg2: memref<768x256xf32, #tpu.memory_space<vmem>>, %arg3: memref<40x256xf32, #tpu.memory_space<vmem>>, %arg4: memref<1x8xf32, #tpu.memory_space<vmem>>) attributes {dimension_semantics = [#tpu.dimension_semantics<parallel>], iteration_bounds = array<i64: 1>, scalar_prefetch = 0 : i64, scratch_operands = 0 : i64, tpu.core_type = #tpu.core_type<tc>, window_params = [{transform_indices = @transform_0, window_bounds = array<i64: 1, 256>}, {pipeline_mode = #tpu.pipeline_mode<synchronous>, transform_indices = @transform_1, window_bounds = array<i64: 768, 256>}, {pipeline_mode = #tpu.pipeline_mode<synchronous>, transform_indices = @transform_2, window_bounds = array<i64: 40, 256>}, {transform_indices = @transform_3, window_bounds = array<i64: 1, 8>}]} {
    %c0 = arith.constant 0 : index
    %c0_0 = arith.constant 0 : index
    %0 = vector.load %arg2[%c0, %c0_0] : memref<768x256xf32, #tpu.memory_space<vmem>>, vector<256x256xf32>
    %c256 = arith.constant 256 : index
    %c0_1 = arith.constant 0 : index
    %1 = vector.load %arg2[%c256, %c0_1] : memref<768x256xf32, #tpu.memory_space<vmem>>, vector<256x256xf32>
    %c512 = arith.constant 512 : index
    %c0_2 = arith.constant 0 : index
    %2 = vector.load %arg2[%c512, %c0_2] : memref<768x256xf32, #tpu.memory_space<vmem>>, vector<256x256xf32>
    %c0_3 = arith.constant 0 : index
    %c0_4 = arith.constant 0 : index
    %3 = vector.load %arg3[%c0_3, %c0_4] : memref<40x256xf32, #tpu.memory_space<vmem>>, vector<1x256xf32>
    %c8 = arith.constant 8 : index
    %c0_5 = arith.constant 0 : index
    %4 = vector.load %arg3[%c8, %c0_5] : memref<40x256xf32, #tpu.memory_space<vmem>>, vector<1x256xf32>
    %c16 = arith.constant 16 : index
    %c0_6 = arith.constant 0 : index
    %5 = vector.load %arg3[%c16, %c0_6] : memref<40x256xf32, #tpu.memory_space<vmem>>, vector<1x256xf32>
    %c24 = arith.constant 24 : index
    %c0_7 = arith.constant 0 : index
    %6 = vector.load %arg3[%c24, %c0_7] : memref<40x256xf32, #tpu.memory_space<vmem>>, vector<1x256xf32>
    %7 = vector.extract_strided_slice %6 {offsets = [0, 0], sizes = [1, 8], strides = [1, 1]} : vector<1x256xf32> to vector<1x8xf32>
    %c32 = arith.constant 32 : index
    %c0_8 = arith.constant 0 : index
    %8 = vector.load %arg3[%c32, %c0_8] : memref<40x256xf32, #tpu.memory_space<vmem>>, vector<8x256xf32>
    %c0_9 = arith.constant 0 : index
    %c0_10 = arith.constant 0 : index
    %9 = vector.load %arg1[%c0_9, %c0_10] : memref<1x256xf32, #tpu.memory_space<vmem>>, vector<1x256xf32>
    %cst = arith.constant dense<0.000000e+00> : vector<1x256xf32>
    %10 = tpu.matmul %9, %0, %cst {dimension_numbers = #tpu.dot_dimension_numbers<[1], [0], [0], [1], [0, 0, 1, 1], [], []>} : vector<1x256xf32>, vector<256x256xf32>, vector<1x256xf32> -> vector<1x256xf32>
    %11 = arith.addf %10, %3 : vector<1x256xf32>
    %cst_11 = arith.constant 0.000000e+00 : f32
    %12 = vector.broadcast %cst_11 : f32 to vector<1x256xf32>
    %13 = arith.maximumf %11, %12 : vector<1x256xf32>
    %cst_12 = arith.constant dense<0.000000e+00> : vector<1x256xf32>
    %14 = tpu.matmul %13, %1, %cst_12 {dimension_numbers = #tpu.dot_dimension_numbers<[1], [0], [0], [1], [0, 0, 1, 1], [], []>} : vector<1x256xf32>, vector<256x256xf32>, vector<1x256xf32> -> vector<1x256xf32>
    %15 = arith.addf %14, %4 : vector<1x256xf32>
    %cst_13 = arith.constant 0.000000e+00 : f32
    %16 = vector.broadcast %cst_13 : f32 to vector<1x256xf32>
    %17 = arith.maximumf %15, %16 : vector<1x256xf32>
    %cst_14 = arith.constant dense<0.000000e+00> : vector<1x256xf32>
    %18 = tpu.matmul %17, %2, %cst_14 {dimension_numbers = #tpu.dot_dimension_numbers<[1], [0], [0], [1], [0, 0, 1, 1], [], []>} : vector<1x256xf32>, vector<256x256xf32>, vector<1x256xf32> -> vector<1x256xf32>
    %19 = arith.addf %18, %5 : vector<1x256xf32>
    %cst_15 = arith.constant 0.000000e+00 : f32
    %20 = vector.broadcast %cst_15 : f32 to vector<1x256xf32>
    %21 = arith.maximumf %19, %20 : vector<1x256xf32>
    %cst_16 = arith.constant dense<0.000000e+00> : vector<1x8xf32>
    %22 = tpu.matmul %21, %8, %cst_16 {dimension_numbers = #tpu.dot_dimension_numbers<[1], [1], [0], [0], [0, 0, 1, 0], [], []>} : vector<1x256xf32>, vector<8x256xf32>, vector<1x8xf32> -> vector<1x8xf32>
    %23 = arith.addf %22, %7 : vector<1x8xf32>
    %c0_17 = arith.constant 0 : index
    %c0_18 = arith.constant 0 : index
    %24 = vector.load %arg4[%c0_17, %c0_18] : memref<1x8xf32, #tpu.memory_space<vmem>>, vector<1x8xf32>
    tpu.vector_store %arg4[%c0_17, %c0_18], %23 {strides = array<i32>} : memref<1x8xf32, #tpu.memory_space<vmem>>, vector<1x8xf32>,
    return
  }
  func.func @transform_0(%arg0: i32) -> (i32, i32) {
    %c0_i32 = arith.constant 0 : i32
    %c0_i32_0 = arith.constant 0 : i32
    return %arg0, %c0_i32 : i32, i32
  }
  func.func @transform_1(%arg0: i32) -> (i32, i32) {
    %c0_i32 = arith.constant 0 : i32
    %c0_i32_0 = arith.constant 0 : i32
    %c0_i32_1 = arith.constant 0 : i32
    return %c0_i32, %c0_i32_0 : i32, i32
  }
  func.func @transform_2(%arg0: i32) -> (i32, i32) {
    %c0_i32 = arith.constant 0 : i32
    %c0_i32_0 = arith.constant 0 : i32
    %c0_i32_1 = arith.constant 0 : i32
    return %c0_i32, %c0_i32_0 : i32, i32
  }
  func.func @transform_3(%arg0: i32) -> (i32, i32) {
    %c0_i32 = arith.constant 0 : i32
    %c0_i32_0 = arith.constant 0 : i32
    return %arg0, %c0_i32 : i32, i32
  }
}

</mosaic_0001>

<bundles_post_ra>
// kernel: tpu_custom_call.1
= control target key start
LH: loop header
LB: loop body
LE: loop exit
PB: predicated region body
PF: predicated region fallthrough
CT: control target
= control target key end

     0   :  { %8 = vsyncpa [#allocation3], 0  ;;  %s757_s0 = inlined_call_operand.hbm [shape: f32[1,256], index: 0, kind: input, shape index: {}]   ;;  %s758_s1 = inlined_call_operand.hbm [shape: f32[768,256], index: 1, kind: input, shape index: {}]   ;;  %s759_s2 = inlined_call_operand.hbm [shape: f32[40,256], index: 2, kind: input, shape index: {}]   ;;  %s760_s3 = inlined_call_operand.hbm [shape: f32[1,8], index: 3, kind: output, shape index: {}]  }
   0x1   :  { %9 = vsyncpa [#allocation6], 0 }
   0x2   :  { %10 = vsyncpa [#allocation4], 0  ;;  %s699_s12 = smov [#allocation5]  }
   0x3   :  { %s26_s13 = sshll.u32 %s699_s12, 4  ;;  %s27_s13 = int_to_ptr.vmem [resolvable:$true] %s26_s13 }
   0x4   :  { %s621_s14 = scalar_lea.vmem %s27_s13, 24576  ;;  %p626_p1 = scmp.lt.s32.totalorder %s27_s13, %s27_s13 }
   0x5   :  { %p622_p0 = scmp.ne.s32.totalorder %s27_s13, %s621_s14  ;;  %p627_p2 = scmp.lt.s32.totalorder %s621_s14, %s621_s14 }
   0x7   :  { %p628_p3 = por %p627_p2, %p626_p1 }
   0x9   :  { %p629_p4 = pnand %p628_p3, %p622_p0 }
   0xb   :  { %632 = shalt.err (!%p629_p4)
}
   0xc   :  { %s700_s15 = smov 256   ;;  %s701_s16 = smov 16  }
   0xd   :  { %32 = dma.hbm_to_vmem [thread:$0]  %s758_s1, 24576, %s27_s13, [#allocation6], %s700_s15, %s700_s15, %s701_s16  }
   0xe   :  { %s702_s19 = smov [#allocation2]   ;;  %s703_s21 = smov [#allocation7]  }
   0xf   :  { %s17_s20 = sshll.u32 %s702_s19, 4  ;;  %s38_s22 = sshll.u32 %s703_s21, 4  ;;  %s18_s20 = int_to_ptr.vmem [resolvable:$true] %s17_s20  ;;  %s39_s22 = int_to_ptr.vmem [resolvable:$true] %s38_s22 }
  0x10   :  { %s641_s23 = scalar_lea.vmem %s18_s20, 32  ;;  %p646_p6 = scmp.lt.s32.totalorder %s18_s20, %s18_s20 }
  0x11   :  { %p642_p5 = scmp.ne.s32.totalorder %s18_s20, %s641_s23  ;;  %p647_p7 = scmp.lt.s32.totalorder %s641_s23, %s641_s23 }
  0x13   :  { %p648_p8 = por %p647_p7, %p646_p6 }
  0x15   :  { %p649_p9 = pnand %p648_p8, %p642_p5 }
  0x17   :  { %652 = shalt.err (!%p649_p9)
}
  0x18   :  { %20 = dma.hbm_to_vmem [thread:$0]  %s757_s0, 32, %s18_s20, [#allocation3]  }
  0x19   :  { %s661_s26 = scalar_lea.vmem %s39_s22, 1280  ;;  %p666_p11 = scmp.lt.s32.totalorder %s39_s22, %s39_s22 }
  0x1a   :  { %p662_p10 = scmp.ne.s32.totalorder %s39_s22, %s661_s26  ;;  %p667_p12 = scmp.lt.s32.totalorder %s661_s26, %s661_s26 }
  0x1c   :  { %p668_p13 = por %p667_p12, %p666_p11 }
  0x1e   :  { %p669_p0 = pnand %p668_p13, %p662_p10 }
  0x20   :  { %672 = shalt.err (!%p669_p0)
}
  0x21   :  { %44 = dma.hbm_to_vmem [thread:$0]  %s759_s2, 1280, %s39_s22, [#allocation6], %s700_s15, %s700_s15, %s701_s16  }
  0x22   :  { %693 = dma.done.wait [#allocation3], 32  }
  0x23   :  { %694 = vsyncadd [#allocation3], 4294967264 }
  0x24   :  { %695 = dma.done.wait [#allocation6], 25856  }
  0x25   :  { %696 = vsyncadd [#allocation6], 4294941440  ;;  %v85_v0 = vld [vmem:[#allocation5 + $0xf8] sm:$0xff]  ;;  %v84_v1 = vld [vmem:[#allocation5 + $0xf0] sm:$0xff]  ;;  %v257_v13 = vlaneseq  ;;  %s704_s0 = smov [#allocation8]   ;;  %vm589_vm0 = vcmask 57344  }
  0x26   :  { %v83_v2 = vld [vmem:[#allocation5 + $0xe8] sm:$0xff]  ;;  %278 = vmatprep.subr.mxu0 %v85_v0  ;;  %v82_v3 = vld [vmem:[#allocation5 + $0xe0] sm:$0xff]  ;;  %v81_v4 = vld [vmem:[#allocation5 + $0xd8] sm:$0xff]  ;;  %s597_s2 = sshll.u32 %s704_s0, 4  ;;  %s598_s2 = int_to_ptr.vmem [resolvable:$true] %s597_s2 }
  0x27   :  { %279 = vmatpush1.msra.mxu0 %v84_v1  ;;  %v80_v5 = vld [vmem:[#allocation5 + $0xd0] sm:$0xff]  ;;  %v79_v6 = vld [vmem:[#allocation5 + $0xc8] sm:$0xff]  ;;  %v78_v7 = vld [vmem:[#allocation5 + $0xc0] sm:$0xff]  ;;  %v734_v18 = vshrl.u32 %v257_v13, 7  ;;  %s673_s28 = scalar_lea.vmem %s598_s2, 16  ;;  %s677_s29 = scalar_lea.vmem %s598_s2, 32 }
  0x28   :  { %280 = vmatprep.subr.mxu0 %v83_v2  ;;  %v77_v8 = vld [vmem:[#allocation5 + $0xb8] sm:$0xff]  ;;  %v76_v9 = vld [vmem:[#allocation5 + $0xb0] sm:$0xff]  ;;  %v75_v10 = vld [vmem:[#allocation5 + $0xa8] sm:$0xff]  ;;  %p674_p1 = scmp.ne.s32.totalorder %s598_s2, %s673_s28  ;;  %p678_p2 = scmp.lt.s32.totalorder %s598_s2, %s598_s2 }
  0x29   :  { %281 = vmatpush1.msra.mxu0 %v82_v3  ;;  %v74_v11 = vld [vmem:[#allocation5 + $0xa0] sm:$0xff]  ;;  %v73_v12 = vld [vmem:[#allocation5 + $0x98] sm:$0xff]  ;;  %v72_v14 = vld [vmem:[#allocation5 + $0x90] sm:$0xff]  ;;  %v737_v23 = vsub.s32 1, %v734_v18  ;;  %p679_p3 = scmp.lt.s32.totalorder %s677_s29, %s673_s28 }
  0x2a   :  { %282 = vmatprep.subr.mxu0 %v81_v4  ;;  %v71_v15 = vld [vmem:[#allocation5 + $0x88] sm:$0xff]  ;;  %v70_v16 = vld [vmem:[#allocation5 + $0x80] sm:$0xff]  ;;  %v69_v17 = vld [vmem:[#allocation5 + $0x78] sm:$0xff] }
  0x2b   :  { %283 = vmatpush1.msra.mxu0 %v80_v5  ;;  %v68_v19 = vld [vmem:[#allocation5 + $0x70] sm:$0xff]  ;;  %v67_v20 = vld [vmem:[#allocation5 + $0x68] sm:$0xff]  ;;  %v66_v21 = vld [vmem:[#allocation5 + $0x60] sm:$0xff]  ;;  %p680_p4 = por %p679_p3, %p678_p2 }
  0x2c   :  { %284 = vmatprep.subr.mxu0 %v79_v6  ;;  %v65_v22 = vld [vmem:[#allocation5 + $0x58] sm:$0xff]  ;;  %v64_v24 = vld [vmem:[#allocation5 + $0x50] sm:$0xff]  ;;  %v63_v25 = vld [vmem:[#allocation5 + $0x48] sm:$0xff] }
  0x2d   :  { %285 = vmatpush1.msra.mxu0 %v78_v7  ;;  %v62_v26 = vld [vmem:[#allocation5 + $0x40] sm:$0xff]  ;;  %v739_v27 = vld [vmem:[#allocation2] sm:$0x3]  ;;  %v148_v31 = vld [vmem:[#allocation5 + $0x2f0] sm:$0xff]  ;;  %p681_p5 = pnand %p680_p4, %p674_p1 }
  0x2e   :  { %286 = vmatprep.subr.mxu0 %v77_v8  ;;  %v149_v28 = vld [vmem:[#allocation5 + $0x2f8] sm:$0xff]  ;;  %v264_v30 = vrot.slane %v739_v27, %v737_v23  ;;  %v147_v32 = vld [vmem:[#allocation5 + $0x2e8] sm:$0xff]  ;;  %v60_v33 = vld [vmem:[#allocation5 + $0x30] sm:$0xff] }
  0x2f   :  { %287 = vmatpush1.msra.mxu0 %v76_v9  ;;  %v61_v29 = vld [vmem:[#allocation5 + $0x38] sm:$0xff]  ;;  %362 = vmatprep.subr.mxu1 %v149_v28  ;;  %v146_v34 = vld [vmem:[#allocation5 + $0x2e0] sm:$0xff]  ;;  %v59_v35 = vld [vmem:[#allocation5 + $0x28] sm:$0xff] }
  0x30   :  { %288 = vmatprep.subr.mxu0 %v75_v10  ;;  %363 = vmatpush1.msra.mxu1 %v148_v31  ;;  %v145_v36 = vld [vmem:[#allocation5 + $0x2d8] sm:$0xff]  ;;  %v58_v37 = vld [vmem:[#allocation5 + $0x20] sm:$0xff]  ;;  %v144_v38 = vld [vmem:[#allocation5 + $0x2d0] sm:$0xff] }
  0x31   :  { %289 = vmatpush1.msra.mxu0 %v74_v11  ;;  %342 = vmatprep.mubr.f32.mxu0 %v264_v30  ;;  %v57_v39 = vld [vmem:[#allocation5 + $0x18] sm:$0xff]  ;;  %v143_v40 = vld [vmem:[#allocation5 + $0x2c8] sm:$0xff]  ;;  %v56_v41 = vld [vmem:[#allocation5 + $0x10] sm:$0xff] }
  0x32   :  { %290 = vmatprep.subr.mxu0 %v73_v12  ;;  %364 = vmatprep.subr.mxu1 %v147_v32  ;;  %v142_v42 = vld [vmem:[#allocation5 + $0x2c0] sm:$0xff]  ;;  %v55_v43 = vld [vmem:[#allocation5 + $0x8] sm:$0xff]  ;;  %v141_v44 = vld [vmem:[#allocation5 + $0x2b8] sm:$0xff] }
  0x33   :  { %291 = vmatpush1.msra.mxu0 %v72_v14  ;;  %365 = vmatpush1.msra.mxu1 %v146_v34  ;;  %v54_v45 = vld [vmem:[#allocation5] sm:$0xff]  ;;  %v140_v46 = vld [vmem:[#allocation5 + $0x2b0] sm:$0xff]  ;;  %v117_v47 = vld [vmem:[#allocation5 + $0x1f8] sm:$0xff] }
  0x34   :  { %292 = vmatprep.subr.mxu0 %v71_v15  ;;  %366 = vmatprep.subr.mxu1 %v145_v36  ;;  %v139_v48 = vld [vmem:[#allocation5 + $0x2a8] sm:$0xff]  ;;  %v116_v49 = vld [vmem:[#allocation5 + $0x1f0] sm:$0xff]  ;;  %v138_v50 = vld [vmem:[#allocation5 + $0x2a0] sm:$0xff] }
  0x35   :  { %293 = vmatpush1.msra.mxu0 %v70_v16  ;;  %367 = vmatpush1.msra.mxu1 %v144_v38  ;;  %v115_v51 = vld [vmem:[#allocation5 + $0x1e8] sm:$0xff]  ;;  %v137_v52 = vld [vmem:[#allocation5 + $0x298] sm:$0xff]  ;;  %v114_v53 = vld [vmem:[#allocation5 + $0x1e0] sm:$0xff] }
  0x36   :  { %294 = vmatprep.subr.mxu0 %v69_v17  ;;  %368 = vmatprep.subr.mxu1 %v143_v40  ;;  %v136_v54 = vld [vmem:[#allocation5 + $0x290] sm:$0xff]  ;;  %v113_v55 = vld [vmem:[#allocation5 + $0x1d8] sm:$0xff]  ;;  %v135_v56 = vld [vmem:[#allocation5 + $0x288] sm:$0xff] }
  0x37   :  { %295 = vmatpush1.msra.mxu0 %v68_v19  ;;  %369 = vmatpush1.msra.mxu1 %v142_v42  ;;  %v112_v57 = vld [vmem:[#allocation5 + $0x1d0] sm:$0xff]  ;;  %v134_v58 = vld [vmem:[#allocation5 + $0x280] sm:$0xff]  ;;  %v111_v59 = vld [vmem:[#allocation5 + $0x1c8] sm:$0xff] }
  0x38   :  { %296 = vmatprep.subr.mxu0 %v67_v20  ;;  %370 = vmatprep.subr.mxu1 %v141_v44  ;;  %v133_v60 = vld [vmem:[#allocation5 + $0x278] sm:$0xff]  ;;  %v110_v61 = vld [vmem:[#allocation5 + $0x1c0] sm:$0xff]  ;;  %v132_v62 = vld [vmem:[#allocation5 + $0x270] sm:$0xff] }
  0x39   :  { %297 = vmatpush1.msra.mxu0 %v66_v21  ;;  %371 = vmatpush1.msra.mxu1 %v140_v46  ;;  %v109_v63 = vld [vmem:[#allocation5 + $0x1b8] sm:$0xff]  ;;  %v131_v0 = vld [vmem:[#allocation5 + $0x268] sm:$0xff]  ;;  %v108_v1 = vld [vmem:[#allocation5 + $0x1b0] sm:$0xff] }
  0x3a   :  { %298 = vmatprep.subr.mxu0 %v65_v22  ;;  %372 = vmatprep.subr.mxu1 %v139_v48  ;;  %v130_v2 = vld [vmem:[#allocation5 + $0x260] sm:$0xff]  ;;  %v107_v3 = vld [vmem:[#allocation5 + $0x1a8] sm:$0xff]  ;;  %v129_v4 = vld [vmem:[#allocation5 + $0x258] sm:$0xff] }
  0x3b   :  { %299 = vmatpush1.msra.mxu0 %v64_v24  ;;  %373 = vmatpush1.msra.mxu1 %v138_v50  ;;  %v106_v5 = vld [vmem:[#allocation5 + $0x1a0] sm:$0xff]  ;;  %v128_v6 = vld [vmem:[#allocation5 + $0x250] sm:$0xff]  ;;  %v105_v7 = vld [vmem:[#allocation5 + $0x198] sm:$0xff] }
  0x3c   :  { %300 = vmatprep.subr.mxu0 %v63_v25  ;;  %374 = vmatprep.subr.mxu1 %v137_v52  ;;  %v127_v8 = vld [vmem:[#allocation5 + $0x248] sm:$0xff]  ;;  %v104_v9 = vld [vmem:[#allocation5 + $0x190] sm:$0xff]  ;;  %v126_v10 = vld [vmem:[#allocation5 + $0x240] sm:$0xff] }
  0x3d   :  { %301 = vmatpush1.msra.mxu0 %v62_v26  ;;  %375 = vmatpush1.msra.mxu1 %v136_v54  ;;  %v103_v11 = vld [vmem:[#allocation5 + $0x188] sm:$0xff]  ;;  %v125_v12 = vld [vmem:[#allocation5 + $0x238] sm:$0xff]  ;;  %v102_v13 = vld [vmem:[#allocation5 + $0x180] sm:$0xff] }
  0x3e   :  { %302 = vmatprep.subr.mxu0 %v61_v29  ;;  %376 = vmatprep.subr.mxu1 %v135_v56  ;;  %v124_v14 = vld [vmem:[#allocation5 + $0x230] sm:$0xff]  ;;  %v101_v15 = vld [vmem:[#allocation5 + $0x178] sm:$0xff]  ;;  %v123_v16 = vld [vmem:[#allocation5 + $0x228] sm:$0xff] }
  0x3f   :  { %303 = vmatpush1.msra.mxu0 %v60_v33  ;;  %377 = vmatpush1.msra.mxu1 %v134_v58  ;;  %v100_v17 = vld [vmem:[#allocation5 + $0x170] sm:$0xff]  ;;  %v122_v19 = vld [vmem:[#allocation5 + $0x220] sm:$0xff]  ;;  %v99_v20 = vld [vmem:[#allocation5 + $0x168] sm:$0xff] }
  0x40   :  { %304 = vmatprep.subr.mxu0 %v59_v35  ;;  %378 = vmatprep.subr.mxu1 %v133_v60  ;;  %v121_v21 = vld [vmem:[#allocation5 + $0x218] sm:$0xff]  ;;  %v98_v22 = vld [vmem:[#allocation5 + $0x160] sm:$0xff]  ;;  %v120_v24 = vld [vmem:[#allocation5 + $0x210] sm:$0xff] }
  0x41   :  { %305 = vmatpush1.msra.mxu0 %v58_v37  ;;  %379 = vmatpush1.msra.mxu1 %v132_v62  ;;  %v97_v25 = vld [vmem:[#allocation5 + $0x158] sm:$0xff]  ;;  %v119_v26 = vld [vmem:[#allocation5 + $0x208] sm:$0xff]  ;;  %v96_v28 = vld [vmem:[#allocation5 + $0x150] sm:$0xff] }
  0x42   :  { %306 = vmatprep.subr.mxu0 %v57_v39  ;;  %380 = vmatprep.subr.mxu1 %v131_v0  ;;  %v118_v29 = vld [vmem:[#allocation5 + $0x200] sm:$0xff]  ;;  %v95_v30 = vld [vmem:[#allocation5 + $0x148] sm:$0xff]  ;;  %v181_v31 = vld [vmem:[#allocation5 + $0x3f8] sm:$0xff] }
  0x43   :  { %307 = vmatpush1.msra.mxu0 %v56_v41  ;;  %381 = vmatpush1.msra.mxu1 %v130_v2  ;;  %v94_v32 = vld [vmem:[#allocation5 + $0x140] sm:$0xff]  ;;  %v180_v33 = vld [vmem:[#allocation5 + $0x3f0] sm:$0xff]  ;;  %v93_v34 = vld [vmem:[#allocation5 + $0x138] sm:$0xff]  ;;  %v744_v41 = vsub.s32 0, %v734_v18 }
  0x44   :  { %308 = vmatprep.subr.mxu0 %v55_v43  ;;  %382 = vmatprep.subr.mxu1 %v129_v4  ;;  %v179_v35 = vld [vmem:[#allocation5 + $0x3e8] sm:$0xff]  ;;  %v92_v36 = vld [vmem:[#allocation5 + $0x130] sm:$0xff]  ;;  %v178_v37 = vld [vmem:[#allocation5 + $0x3e0] sm:$0xff] }
  0x45   :  { %309 = vmatpush1.msra.mxu0 %v54_v45  ;;  %383 = vmatpush1.msra.mxu1 %v128_v6  ;;  %v91_v38 = vld [vmem:[#allocation5 + $0x128] sm:$0xff]  ;;  %v177_v39 = vld [vmem:[#allocation5 + $0x3d8] sm:$0xff]  ;;  %v90_v40 = vld [vmem:[#allocation5 + $0x120] sm:$0xff]  ;;  %v260_v18 = vrot.slane %v739_v27, %v744_v41 }
  0x46   :  { %310 = vmatprep.subr.mxu0 %v117_v47  ;;  %384 = vmatprep.subr.mxu1 %v127_v8  ;;  %v176_v42 = vld [vmem:[#allocation5 + $0x3d0] sm:$0xff]  ;;  %v89_v43 = vld [vmem:[#allocation5 + $0x118] sm:$0xff]  ;;  %v175_v44 = vld [vmem:[#allocation5 + $0x3c8] sm:$0xff] }
  0x47   :  { %311 = vmatpush2.msra.mxu0 %v116_v49  ;;  %385 = vmatpush1.msra.mxu1 %v126_v10  ;;  %v88_v45 = vld [vmem:[#allocation5 + $0x110] sm:$0xff]  ;;  %v174_v46 = vld [vmem:[#allocation5 + $0x3c0] sm:$0xff]  ;;  %v87_v47 = vld [vmem:[#allocation5 + $0x108] sm:$0xff] }
  0x48   :  { %312 = vmatprep.subr.mxu0 %v115_v51  ;;  %386 = vmatprep.subr.mxu1 %v125_v12  ;;  %v173_v48 = vld [vmem:[#allocation5 + $0x3b8] sm:$0xff]  ;;  %v86_v49 = vld [vmem:[#allocation5 + $0x100] sm:$0xff]  ;;  %v172_v50 = vld [vmem:[#allocation5 + $0x3b0] sm:$0xff] }
  0x49   :  { %313 = vmatpush2.msra.mxu0 %v114_v53  ;;  %387 = vmatpush1.msra.mxu1 %v124_v14  ;;  %v171_v51 = vld [vmem:[#allocation5 + $0x3a8] sm:$0xff]  ;;  %v170_v52 = vld [vmem:[#allocation5 + $0x3a0] sm:$0xff]  ;;  %v169_v53 = vld [vmem:[#allocation5 + $0x398] sm:$0xff] }
  0x4a   :  { %314 = vmatprep.subr.mxu0 %v113_v55  ;;  %388 = vmatprep.subr.mxu1 %v123_v16  ;;  %v168_v54 = vld [vmem:[#allocation5 + $0x390] sm:$0xff]  ;;  %v167_v55 = vld [vmem:[#allocation5 + $0x388] sm:$0xff]  ;;  %v166_v56 = vld [vmem:[#allocation5 + $0x380] sm:$0xff] }
  0x4b   :  { %315 = vmatpush2.msra.mxu0 %v112_v57  ;;  %389 = vmatpush1.msra.mxu1 %v122_v19  ;;  %v165_v27 = vld [vmem:[#allocation5 + $0x378] sm:$0xff]  ;;  %v164_v57 = vld [vmem:[#allocation5 + $0x370] sm:$0xff]  ;;  %v163_v58 = vld [vmem:[#allocation5 + $0x368] sm:$0xff] }
  0x4c   :  { %316 = vmatprep.subr.mxu0 %v111_v59  ;;  %390 = vmatprep.subr.mxu1 %v121_v21  ;;  %v162_v59 = vld [vmem:[#allocation5 + $0x360] sm:$0xff]  ;;  %v161_v60 = vld [vmem:[#allocation5 + $0x358] sm:$0xff]  ;;  %v159_v62 = vld [vmem:[#allocation5 + $0x348] sm:$0xff] }
  0x4d   :  { %317 = vmatpush2.msra.mxu0 %v110_v61  ;;  %391 = vmatpush1.msra.mxu1 %v120_v24  ;;  %v160_v61 = vld [vmem:[#allocation5 + $0x350] sm:$0xff]  ;;  %v157_v0 = vld [vmem:[#allocation5 + $0x338] sm:$0xff]  ;;  %v155_v2 = vld [vmem:[#allocation5 + $0x328] sm:$0xff] }
  0x4e   :  { %318 = vmatprep.subr.mxu0 %v109_v63  ;;  %392 = vmatprep.subr.mxu1 %v119_v26  ;;  %v158_v63 = vld [vmem:[#allocation5 + $0x340] sm:$0xff]  ;;  %v153_v4 = vld [vmem:[#allocation5 + $0x318] sm:$0xff]  ;;  %v151_v6 = vld [vmem:[#allocation5 + $0x308] sm:$0xff] }
  0x4f   :  { %319 = vmatpush2.msra.mxu0 %v108_v1  ;;  %393 = vmatpush1.msra.mxu1 %v118_v29  ;;  %v156_v1 = vld [vmem:[#allocation5 + $0x330] sm:$0xff]  ;;  %v213_v8 = vld [vmem:[#allocation5 + $0x4f8] sm:$0xff]  ;;  %v211_v10 = vld [vmem:[#allocation5 + $0x4e8] sm:$0xff] }
  0x50   :  { %320 = vmatprep.subr.mxu0 %v107_v3  ;;  %394 = vmatprep.subr.mxu1 %v181_v31  ;;  %v154_v3 = vld [vmem:[#allocation5 + $0x320] sm:$0xff]  ;;  %v209_v12 = vld [vmem:[#allocation5 + $0x4d8] sm:$0xff]  ;;  %v207_v14 = vld [vmem:[#allocation5 + $0x4c8] sm:$0xff] }
  0x51   :  { %321 = vmatpush2.msra.mxu0 %v106_v5  ;;  %395 = vmatpush2.msra.mxu1 %v180_v33  ;;  %v152_v5 = vld [vmem:[#allocation5 + $0x310] sm:$0xff]  ;;  %v205_v16 = vld [vmem:[#allocation5 + $0x4b8] sm:$0xff]  ;;  %v203_v19 = vld [vmem:[#allocation5 + $0x4a8] sm:$0xff] }
  0x52   :  { %322 = vmatprep.subr.mxu0 %v105_v7  ;;  %396 = vmatprep.subr.mxu1 %v179_v35  ;;  %v150_v7 = vld [vmem:[#allocation5 + $0x300] sm:$0xff]  ;;  %v201_v21 = vld [vmem:[#allocation5 + $0x498] sm:$0xff]  ;;  %v199_v24 = vld [vmem:[#allocation5 + $0x488] sm:$0xff] }
  0x53   :  { %323 = vmatpush2.msra.mxu0 %v104_v9  ;;  %397 = vmatpush2.msra.mxu1 %v178_v37  ;;  %v212_v9 = vld [vmem:[#allocation5 + $0x4f0] sm:$0xff]  ;;  %v197_v26 = vld [vmem:[#allocation5 + $0x478] sm:$0xff]  ;;  %v195_v29 = vld [vmem:[#allocation5 + $0x468] sm:$0xff] }
  0x54   :  { %324 = vmatprep.subr.mxu0 %v103_v11  ;;  %398 = vmatprep.subr.mxu1 %v177_v39  ;;  %v210_v11 = vld [vmem:[#allocation5 + $0x4e0] sm:$0xff]  ;;  %v193_v31 = vld [vmem:[#allocation5 + $0x458] sm:$0xff]  ;;  %v191_v33 = vld [vmem:[#allocation5 + $0x448] sm:$0xff] }
  0x55   :  { %325 = vmatpush2.msra.mxu0 %v102_v13  ;;  %399 = vmatpush2.msra.mxu1 %v176_v42  ;;  %v208_v13 = vld [vmem:[#allocation5 + $0x4d0] sm:$0xff]  ;;  %v189_v35 = vld [vmem:[#allocation5 + $0x438] sm:$0xff]  ;;  %v187_v37 = vld [vmem:[#allocation5 + $0x428] sm:$0xff] }
  0x56   :  { %326 = vmatprep.subr.mxu0 %v101_v15  ;;  %400 = vmatprep.subr.mxu1 %v175_v44  ;;  %v206_v15 = vld [vmem:[#allocation5 + $0x4c0] sm:$0xff]  ;;  %v185_v39 = vld [vmem:[#allocation5 + $0x418] sm:$0xff]  ;;  %v183_v42 = vld [vmem:[#allocation5 + $0x408] sm:$0xff] }
  0x57   :  { %327 = vmatpush2.msra.mxu0 %v100_v17  ;;  %401 = vmatpush2.msra.mxu1 %v174_v46  ;;  %v204_v17 = vld [vmem:[#allocation5 + $0x4b0] sm:$0xff]  ;;  %v245_v44 = vld [vmem:[#allocation5 + $0x5f8] sm:$0xff]  ;;  %v243_v46 = vld [vmem:[#allocation5 + $0x5e8] sm:$0xff] }
  0x58   :  { %328 = vmatprep.subr.mxu0 %v99_v20  ;;  %402 = vmatprep.subr.mxu1 %v173_v48  ;;  %v202_v20 = vld [vmem:[#allocation5 + $0x4a0] sm:$0xff]  ;;  %v241_v48 = vld [vmem:[#allocation5 + $0x5d8] sm:$0xff] }
  0x59   :  { %329 = vmatpush2.msra.mxu0 %v98_v22  ;;  %403 = vmatpush2.msra.mxu1 %v172_v50  ;;  %v200_v22 = vld [vmem:[#allocation5 + $0x490] sm:$0xff]  ;;  %v238_v50 = vld [vmem:[#allocation5 + $0x5c0] sm:$0xff] }
  0x5a   :  { %330 = vmatprep.subr.mxu0 %v97_v25  ;;  %404 = vmatprep.subr.mxu1 %v171_v51  ;;  %v198_v25 = vld [vmem:[#allocation5 + $0x480] sm:$0xff]  ;;  %v237_v51 = vld [vmem:[#allocation5 + $0x5b8] sm:$0xff] }
  0x5b   :  { %331 = vmatpush2.msra.mxu0 %v96_v28  ;;  %405 = vmatpush2.msra.mxu1 %v170_v52  ;;  %v196_v28 = vld [vmem:[#allocation5 + $0x470] sm:$0xff] }
  0x5c   :  { %332 = vmatprep.subr.mxu0 %v95_v30  ;;  %406 = vmatprep.subr.mxu1 %v169_v53  ;;  %v194_v30 = vld [vmem:[#allocation5 + $0x460] sm:$0xff]  ;;  %v236_v52 = vld [vmem:[#allocation5 + $0x5b0] sm:$0xff]  ;;  %v235_v53 = vld [vmem:[#allocation5 + $0x5a8] sm:$0xff] }
  0x5d   :  { %333 = vmatpush2.msra.mxu0 %v94_v32  ;;  %407 = vmatpush2.msra.mxu1 %v168_v54  ;;  %v192_v32 = vld [vmem:[#allocation5 + $0x450] sm:$0xff]  ;;  %v234_v54 = vld [vmem:[#allocation5 + $0x5a0] sm:$0xff] }
  0x5e   :  { %334 = vmatprep.subr.mxu0 %v93_v34  ;;  %408 = vmatprep.subr.mxu1 %v167_v55  ;;  %v190_v34 = vld [vmem:[#allocation5 + $0x440] sm:$0xff]  ;;  %v233_v55 = vld [vmem:[#allocation5 + $0x598] sm:$0xff] }
  0x5f   :  { %335 = vmatpush2.msra.mxu0 %v92_v36  ;;  %409 = vmatpush2.msra.mxu1 %v166_v56  ;;  %v188_v36 = vld [vmem:[#allocation5 + $0x430] sm:$0xff] }
  0x60   :  { %336 = vmatprep.subr.mxu0 %v91_v38  ;;  %410 = vmatprep.subr.mxu1 %v165_v27  ;;  %v186_v38 = vld [vmem:[#allocation5 + $0x420] sm:$0xff]  ;;  %v232_v56 = vld [vmem:[#allocation5 + $0x590] sm:$0xff]  ;;  %v231_v27 = vld [vmem:[#allocation5 + $0x588] sm:$0xff] }
  0x61   :  { %337 = vmatpush2.msra.mxu0 %v90_v40  ;;  %411 = vmatpush2.msra.mxu1 %v164_v57  ;;  %v184_v40 = vld [vmem:[#allocation5 + $0x410] sm:$0xff]  ;;  %v230_v57 = vld [vmem:[#allocation5 + $0x580] sm:$0xff] }
  0x62   :  { %338 = vmatprep.subr.mxu0 %v89_v43  ;;  %412 = vmatprep.subr.mxu1 %v163_v58  ;;  %v182_v43 = vld [vmem:[#allocation5 + $0x400] sm:$0xff]  ;;  %v229_v58 = vld [vmem:[#allocation5 + $0x578] sm:$0xff] }
  0x63   :  { %339 = vmatpush2.msra.mxu0 %v88_v45  ;;  %413 = vmatpush2.msra.mxu1 %v162_v59  ;;  %v244_v45 = vld [vmem:[#allocation5 + $0x5f0] sm:$0xff] }
  0x64   :  { %340 = vmatprep.subr.mxu0 %v87_v47  ;;  %414 = vmatprep.subr.mxu1 %v161_v60  ;;  %v242_v47 = vld [vmem:[#allocation5 + $0x5e0] sm:$0xff]  ;;  %v228_v59 = vld [vmem:[#allocation5 + $0x570] sm:$0xff]  ;;  %v227_v60 = vld [vmem:[#allocation5 + $0x568] sm:$0xff] }
  0x65   :  { %341 = vmatpush2.msra.mxu0 %v86_v49  ;;  %415 = vmatpush2.msra.mxu1 %v160_v61  ;;  %v240_v49 = vld [vmem:[#allocation5 + $0x5d0] sm:$0xff]  ;;  %v226_v61 = vld [vmem:[#allocation5 + $0x560] sm:$0xff] }
  0x66   :  { %343 = vmatmul.mubr.f32.vlgmr.msra.gmra.mxu0 %v260_v18  ;;  %416 = vmatprep.subr.mxu1 %v159_v62  ;;  %v239_v18 = vld [vmem:[#allocation5 + $0x5c8] sm:$0xff]  ;;  %v225_v62 = vld [vmem:[#allocation5 + $0x558] sm:$0xff] }
  0x67   :  { %417 = vmatpush2.msra.mxu1 %v158_v63  ;;  %446 = vmatprep.subr.mxu0 %v213_v8  ;;  %v224_v63 = vld [vmem:[#allocation5 + $0x550] sm:$0xff] }
  0x68   :  { %418 = vmatprep.subr.mxu1 %v157_v0  ;;  %447 = vmatpush1.msra.mxu0 %v212_v9  ;;  %v223_v0 = vld [vmem:[#allocation5 + $0x548] sm:$0xff] }
  0x69   :  { %419 = vmatpush2.msra.mxu1 %v156_v1  ;;  %448 = vmatprep.subr.mxu0 %v211_v10  ;;  %v222_v1 = vld [vmem:[#allocation5 + $0x540] sm:$0xff] }
  0x6a   :  { %420 = vmatprep.subr.mxu1 %v155_v2  ;;  %449 = vmatpush1.msra.mxu0 %v210_v11  ;;  %v246_v2 = vld [vmem:[#allocation7] ss:$8 sm:$0x3]  ;;  %v221_v11 = vld [vmem:[#allocation5 + $0x538] sm:$0xff] }
  0x6b   :  { %421 = vmatpush2.msra.mxu1 %v154_v3  ;;  %450 = vmatprep.subr.mxu0 %v209_v12  ;;  %v271_v3 = vrot.slane %v246_v2, %v744_v41  ;;  %v220_v12 = vld [vmem:[#allocation5 + $0x530] sm:$0xff] }
  0x6c   :  { %422 = vmatprep.subr.mxu1 %v153_v4  ;;  %451 = vmatpush1.msra.mxu0 %v208_v13  ;;  %v275_v4 = vrot.slane %v246_v2, %v737_v23  ;;  %v219_v13 = vld [vmem:[#allocation5 + $0x528] sm:$0xff] }
  0x6d   :  { %423 = vmatpush2.msra.mxu1 %v152_v5  ;;  %452 = vmatprep.subr.mxu0 %v207_v14  ;;  %v218_v14 = vld [vmem:[#allocation5 + $0x520] sm:$0xff] }
  0x6e   :  { %424 = vmatprep.subr.mxu1 %v151_v6  ;;  %453 = vmatpush1.msra.mxu0 %v206_v15  ;;  %v217_v15 = vld [vmem:[#allocation5 + $0x518] sm:$0xff] }
  0x6f   :  { %425 = vmatpush2.msra.mxu1 %v150_v7  ;;  %454 = vmatprep.subr.mxu0 %v205_v16  ;;  %v216_v16 = vld [vmem:[#allocation5 + $0x510] sm:$0xff] }
  0x70   :  { %455 = vmatpush1.msra.mxu0 %v204_v17  ;;  %v215_v17 = vld [vmem:[#allocation5 + $0x508] sm:$0xff] }
  0x71   :  { %456 = vmatprep.subr.mxu0 %v203_v19  ;;  %v214_v19 = vld [vmem:[#allocation5 + $0x500] sm:$0xff] }
  0x72   :  { %457 = vmatpush1.msra.mxu0 %v202_v20  ;;  %v248_v20 = vld [vmem:[#allocation7 + $0x10] ss:$8 sm:$0x3] }
  0x73   :  { %458 = vmatprep.subr.mxu0 %v201_v21  ;;  %v355_v21 = vrot.slane %v248_v20, %v744_v41 }
  0x74   :  { %459 = vmatpush1.msra.mxu0 %v200_v22  ;;  %v359_v22 = vrot.slane %v248_v20, %v737_v23 }
  0x75   :  { %460 = vmatprep.subr.mxu0 %v199_v24 }
  0x76   :  { %461 = vmatpush1.msra.mxu0 %v198_v25 }
  0x77   :  { %462 = vmatprep.subr.mxu0 %v197_v26 }
  0x78   :  { %463 = vmatpush1.msra.mxu0 %v196_v28 }
  0x79   :  { %464 = vmatprep.subr.mxu0 %v195_v29 }
  0x7a   :  { %465 = vmatpush1.msra.mxu0 %v194_v30 }
  0x7b   :  { %466 = vmatprep.subr.mxu0 %v193_v31  ;;  %v254_v31 = vld [vmem:[#allocation7 + $0x48] sm:$0xff] }
  0x7c   :  { %467 = vmatpush1.msra.mxu0 %v192_v32  ;;  %549 = vmatprep.subr.mxu1 %v254_v31  ;;  %v253_v32 = vld [vmem:[#allocation7 + $0x40] sm:$0xff] }
  0x7d   :  { %468 = vmatprep.subr.mxu0 %v191_v33  ;;  %v250_v33 = vld [vmem:[#allocation7 + $0x20] ss:$8 sm:$0x3] }
  0x7e   :  { %469 = vmatpush1.msra.mxu0 %v190_v34  ;;  %v439_v34 = vrot.slane %v250_v33, %v744_v41 }
  0x7f   :  { %470 = vmatprep.subr.mxu0 %v189_v35  ;;  %v443_v35 = vrot.slane %v250_v33, %v737_v23 }
  0x80   :  { %471 = vmatpush1.msra.mxu0 %v188_v36 }
  0x81   :  { %472 = vmatprep.subr.mxu0 %v187_v37 }
  0x82   :  { %473 = vmatpush1.msra.mxu0 %v186_v38 }
  0x83   :  { %474 = vmatprep.subr.mxu0 %v185_v39 }
  0x84   :  { %475 = vmatpush1.msra.mxu0 %v184_v40 }
  0x85   :  { %476 = vmatprep.subr.mxu0 %v183_v42 }
  0x86   :  { %477 = vmatpush1.msra.mxu0 %v182_v43  ;;  %v252_v43 = vld [vmem:[#allocation7 + $0x30] ss:$8 sm:$0x3] }
  0x87   :  { %478 = vmatprep.subr.mxu0 %v245_v44 }
  0x88   :  { %479 = vmatpush2.msra.mxu0 %v244_v45 }
  0x89   :  { %480 = vmatprep.subr.mxu0 %v243_v46 }
  0x8a   :  { %481 = vmatpush2.msra.mxu0 %v242_v47 }
  0x8b   :  { %482 = vmatprep.subr.mxu0 %v241_v48 }
  0x8c   :  { %483 = vmatpush2.msra.mxu0 %v240_v49 }
  0x8d   :  { %484 = vmatprep.subr.mxu0 %v239_v18 }
  0x8e   :  { %485 = vmatpush2.msra.mxu0 %v238_v50 }
  0x8f   :  { %486 = vmatprep.subr.mxu0 %v237_v51 }
  0x90   :  { %487 = vmatpush2.msra.mxu0 %v236_v52 }
  0x91   :  { %488 = vmatprep.subr.mxu0 %v235_v53 }
  0x92   :  { %489 = vmatpush2.msra.mxu0 %v234_v54 }
  0x93   :  { %490 = vmatprep.subr.mxu0 %v233_v55 }
  0x94   :  { %491 = vmatpush2.msra.mxu0 %v232_v56 }
  0x95   :  { %492 = vmatprep.subr.mxu0 %v231_v27 }
  0x96   :  { %493 = vmatpush2.msra.mxu0 %v230_v57 }
  0x97   :  { %494 = vmatprep.subr.mxu0 %v229_v58 }
  0x98   :  { %495 = vmatpush2.msra.mxu0 %v228_v59 }
  0x99   :  { %496 = vmatprep.subr.mxu0 %v227_v60 }
  0x9a   :  { %497 = vmatpush2.msra.mxu0 %v226_v61 }
  0x9b   :  { %498 = vmatprep.subr.mxu0 %v225_v62 }
  0x9c   :  { %499 = vmatpush2.msra.mxu0 %v224_v63 }
  0x9d   :  { %500 = vmatprep.subr.mxu0 %v223_v0 }
  0x9e   :  { %501 = vmatpush2.msra.mxu0 %v222_v1 }
  0x9f   :  { %502 = vmatprep.subr.mxu0 %v221_v11 }
  0xa0   :  { %503 = vmatpush2.msra.mxu0 %v220_v12 }
  0xa1   :  { %504 = vmatprep.subr.mxu0 %v219_v13 }
  0xa2   :  { %505 = vmatpush2.msra.mxu0 %v218_v14 }
  0xa3   :  { %506 = vmatprep.subr.mxu0 %v217_v15 }
  0xa4   :  { %507 = vmatpush2.msra.mxu0 %v216_v16 }
  0xa5   :  { %508 = vmatprep.subr.mxu0 %v215_v17 }
  0xa6   :  { %509 = vmatpush2.msra.mxu0 %v214_v19 }
 0x126   :  { %v344_v5 = vpop.f32.mrf.mxu0 }
 0x127   :  { %v345_v6 = vadd.f32 %v344_v5, %v271_v3 }
 0x128   :  { %v346_v7 = vpop.f32.mrf.mxu0 }
 0x129   :  { %v347_v8 = vadd.f32 %v346_v7, %v275_v4  ;;  %v349_v10 = vmax.f32 %v345_v6, 0.0 }
 0x12b   :  { %v350_v9 = vmax.f32 %v347_v8, 0.0 }
 0x12d   :  { %426 = vmatprep.mubr.f32.mxu1 %v350_v9 }
 0x12e   :  { %427 = vmatmul.mubr.f32.vlgmr.msra.gmra.mxu1 %v349_v10 }
 0x12f   :  { %550 = vmatpush1.xpose.msra.mxu1 %v253_v32 }
 0x1ee   :  { %v428_v24 = vpop.f32.mrf.mxu1 }
 0x1ef   :  { %v429_v25 = vadd.f32 %v428_v24, %v355_v21 }
 0x1f0   :  { %v430_v26 = vpop.f32.mrf.mxu1 }
 0x1f1   :  { %v431_v28 = vadd.f32 %v430_v26, %v359_v22  ;;  %v433_v30 = vmax.f32 %v429_v25, 0.0 }
 0x1f3   :  { %v434_v29 = vmax.f32 %v431_v28, 0.0 }
 0x1f5   :  { %510 = vmatprep.mubr.f32.mxu0 %v434_v29 }
 0x1f6   :  { %511 = vmatmul.mubr.f32.vlgmr.msra.gmra.mxu0 %v433_v30 }
 0x2b6   :  { %v512_v36 = vpop.f32.mrf.mxu0 }
 0x2b7   :  { %v513_v37 = vadd.f32 %v512_v36, %v439_v34 }
 0x2b8   :  { %v514_v38 = vpop.f32.mrf.mxu0 }
 0x2b9   :  { %v515_v39 = vadd.f32 %v514_v38, %v443_v35  ;;  %v517_v42 = vmax.f32 %v513_v37, 0.0 }
 0x2bb   :  { %v518_v40 = vmax.f32 %v515_v39, 0.0 }
 0x2bd   :  { %583 = vmatprep.mubr.f32.mxu1 %v518_v40 }
 0x2be   :  { %584 = vmatmul.mubr.f32.vlgmr.msra.gmra.mxu1 %v517_v42 }
 0x37e   :  { %v585_v44 = vpop.f32.mrf.mxu1 }
 0x37f   :  { %v586_v45 = vadd.f32 %v585_v44, %v252_v43 }
 0x380   :  { %v587_v46 = vpop.f32.mrf.mxu1 }
 0x381   :  { %590 = vst.msk [vmem:[#allocation8] sm:$0x1] %vm589_vm0, %v586_v45 }
 0x382   :  { %684 = shalt.err (!%p681_p5)
}
 0x383   :  { %600 = dma.vmem_to_hbm [thread:$0]  %s598_s2, 16, %s760_s3, [#allocation4]  }
 0x384   :  { %697 = dma.done.wait [#allocation4], 16  }
 0x385   :  { %698 = vsyncadd [#allocation4], 4294967280 }
 0x386   :  { %604 = vsyncpa [#allocation3], 1 }
 0x387   :  { %605 = vsyncpa [#allocation6], 1 }
 0x388   :  { %606 = vsyncpa [#allocation4], 1 }

</bundles_post_ra>
